<compile_context>
chip_gen: v6e
topology: v6e:2x2x1
jax: 0.10.0
libtpu: 0.0.40
codegen_flags: <defaults>
</compile_context>

<pallas_src>
import math
import functools

import jax
import jax.numpy as jnp
from jax.experimental import pallas as pl
from jax.experimental.pallas import tpu as pltpu

# ---------------- configuration (small, consistent with the module) ---------
BATCH = 2
SEQ = 8
EMBED = 64
N_HEADS = 8
EXPANSION = 4
HIDDEN = EXPANSION * EMBED
HEAD_DIM = EMBED // N_HEADS
LN_EPS = 1e-5
NEG_INF = -1e9


# ---------------- Pallas kernel ---------------------------------------------
def _encoder_block_kernel(
    mask_ref,   # (R, C)  f32 additive attention mask (key padding + cross-batch)
    x_ref,      # (R, E)
    wqkv_ref,   # (E, 3E) 1/sqrt(dh) pre-folded into the first E columns
    wo_ref,     # (E, E)
    w1_ref,     # (E, H)
    w2_ref,     # (H, E)
    hmask_ref,  # (C, E)  block-diagonal head mask (host-precomputed constant)
    gsum_ref,   # (C, C)  same-head column grouping (host-precomputed constant)
    vec_ref,    # (8, max(3E, H)) packed biases + LayerNorm params
    o_ref,      # (R, E)
    *,
    n_heads: int,
):
    R, E = x_ref.shape                     # R = bb * S
    H = w1_ref.shape[1]
    f32 = jnp.float32

    x = x_ref[...]                         # (R, E)

    # ---- packed vector parameters (one small DMA, sliced at lane offset 0) ----
    vec = vec_ref[...]
    bqkv = vec[0:1, :3 * E]
    bo   = vec[1:2, :E]
    g1   = vec[2:3, :E]
    be1  = vec[3:4, :E]
    bf1  = vec[4:5, :H]
    bf2  = vec[5:6, :E]
    g2   = vec[6:7, :E]
    be2  = vec[7:8, :E]

    # ---- fused QKV projection over all bb*S rows (single MXU matmul) ----
    # Attention scale is already folded into the Q weight/bias columns, so the
    # q slice below stays a pure view (no extra VPU multiply).
    qkv = jnp.dot(x, wqkv_ref[...], preferred_element_type=f32) + bqkv   # (R, 3E)
    q = qkv[:, :E]
    k = qkv[:, E:2 * E]
    v = qkv[:, 2 * E:]

    # ---- head-batched block-diagonal attention, ALL batch elements at once ----
    # Score columns are ordered c = h*R + r (head-major over the folded rows),
    # so K/V expansion is one jnp.tile of the full (R, E) tensors and scores /
    # denominators / context are each ONE dense, lane-dense (R, C) matmul.
    hmask = hmask_ref[...]                                    # (C, E)
    kexp = jnp.tile(k, (n_heads, 1)) * hmask                  # (C, E)
    vexp = jnp.tile(v, (n_heads, 1)) * hmask                  # (C, E)

    # A @ B^T expressed as a transposed-RHS contraction (MXU-native; no XLU
    # transpose of kexp).
    s = pl.dot(q, kexp, trans_b=True)                         # (R, C) f32
    s = s + mask_ref[...]                                     # padding + cross-batch
    # Global row max is an exact stabilizer: it is constant across every head's
    # (and every batch's) columns of that row, so it cancels in each head's own
    # normalization.  Cross-batch / padded columns sit at <= -1e9 afterwards and
    # exp() flushes them to exactly 0, so they cannot leak into den or context.
    s = s - jnp.max(s, axis=-1, keepdims=True)
    p = jnp.exp(s)
    # Per-head softmax denominators via one matmul.  gsum groups columns by head
    # only (not by batch): den is therefore > 0 on every column (avoids 0/0 on
    # cross-batch columns, whose p is exactly 0), and cross-batch columns add
    # exact zeros to the in-batch sums.  A fully key-padded row degrades to the
    # reference's uniform distribution (the -1e9 constant cancels), not NaN.
    den = jnp.dot(p, gsum_ref[...], preferred_element_type=f32)
    p = p / den                                               # exact division
    attn = jnp.dot(p, vexp, preferred_element_type=f32)       # (R, E)

    # ---- output projection ----
    attn = jnp.dot(attn, wo_ref[...], preferred_element_type=f32) + bo

    # ---- residual + LayerNorm1 (dropout == identity in eval) ----
    res1 = attn + x
    mu1 = jnp.mean(res1, axis=-1, keepdims=True)
    var1 = jnp.mean((res1 - mu1) * (res1 - mu1), axis=-1, keepdims=True)
    n1 = (res1 - mu1) * jax.lax.rsqrt(var1 + LN_EPS) * g1 + be1          # (R, E)

    # ---- feed-forward: Linear -> ReLU -> Linear ----
    h1 = jnp.maximum(
        jnp.dot(n1, w1_ref[...], preferred_element_type=f32) + bf1, 0.0)
    ff = jnp.dot(h1, w2_ref[...], preferred_element_type=f32) + bf2

    # ---- residual + LayerNorm2 (dropout == identity in eval) ----
    res2 = ff + n1
    mu2 = jnp.mean(res2, axis=-1, keepdims=True)
    var2 = jnp.mean((res2 - mu2) * (res2 - mu2), axis=-1, keepdims=True)
    o_ref[...] = (res2 - mu2) * jax.lax.rsqrt(var2 + LN_EPS) * g2 + be2


# ---------------- wrapper ----------------------------------------------------
def encoder_block(x, src_mask_bool, params, *, batch_block=None):
    """x: (B, S, E) float32, src_mask_bool: (B, S) bool (True == padded key).

    batch_block: batch elements fused per grid step.  Default = B (single grid
    step) on ALL TPU generations, including v7x: at B*S = 16 rows, splitting the
    batch across two TensorCores costs more in per-step fixed overhead and
    duplicated weight DMA than it saves, and forfeits the lane-dense
    C = bb*NH*S = 128 attention layout.  Only drop below B once bb*S per core
    reaches ~128+ rows; when scaling B/S up, size bb*S to a multiple of 128
    (v5e MXU) / 256 (v6e, v7x) and re-budget tiles against scoped VMEM
    (32 MiB default; 64 MiB physical ceiling on v7x).
    """
    B, S, E = x.shape
    H = params["w1_t"].shape[1]
    NH = N_HEADS
    assert E % NH == 0
    dh = E // NH
    bb = B if batch_block is None else batch_block
    assert B % bb == 0
    G = B // bb                      # grid steps
    R = bb * S                       # activation rows per grid step
    C = NH * R                       # score columns per grid step
    f32 = jnp.float32

    # ---- host-side parameter prep ------------------------------------------
    # Fold 1/sqrt(dh) into the Q columns of the fused in-projection (weight AND
    # bias) -- free at inference, removes an in-kernel VPU multiply.
    scale_vec = jnp.concatenate(
        [jnp.full((E,), 1.0 / math.sqrt(dh), f32), jnp.ones((2 * E,), f32)])
    wqkv_t = params["wqkv_t"] * scale_vec[None, :]
    bqkv = params["bqkv"] * scale_vec[None, :]

    # Pack all (1, E)/(1, 3E)/(1, H) vectors into one table -> 1 input, 1 DMA.
    width = max(3 * E, H)

    def _pad(v):
        v = v.reshape(-1)
        return jnp.pad(v, (0, width - v.shape[0]))

    vec = jnp.stack(
        [_pad(bqkv), _pad(params["bo"]),
         _pad(params["gamma1"]), _pad(params["beta1"]),
         _pad(params["bf1"]), _pad(params["bf2"]),
         _pad(params["gamma2"]), _pad(params["beta2"])], axis=0)          # (8, width)

    # ---- host-precomputed attention constants (hoisted out of the kernel) ---
    col = jnp.arange(C)
    col_head = col // R              # head index of each score column
    col_row = col % R                # folded (batch-in-block, key) row index
    col_b = col_row // S             # batch element within the block
    col_key = col_row % S            # key position
    row_b = jnp.arange(R) // S       # batch element of each query row

    emb_head = jnp.arange(E) // dh
    head_mask = (col_head[:, None] == emb_head[None, :]).astype(f32)      # (C, E)
    group_sum = (col_head[:, None] == col_head[None, :]).astype(f32)      # (C, C)

    # Additive mask: -1e9 on cross-batch blocks and on padded keys.  -1e9 is far
    # below the f32 exp underflow threshold, so after the row-max subtraction
    # these entries become exactly 0 probability (no leakage into den/context).
    cross = row_b[:, None] != col_b[None, :]                              # (R, C)
    masks = []
    for g in range(G):
        pad = src_mask_bool[g * bb + col_b, col_key]                      # (C,)
        masks.append(jnp.where(cross | pad[None, :], NEG_INF, 0.0).astype(f32))
    attn_mask = jnp.concatenate(masks, axis=0)                            # (G*R, C)

    x2d = x.reshape(B * S, E).astype(f32)

    kernel = functools.partial(_encoder_block_kernel, n_heads=NH)
    full2 = lambda i: (0, 0)

    out2d = pl.pallas_call(
        kernel,
        out_shape=jax.ShapeDtypeStruct((B * S, E), f32),
        grid_spec=pltpu.PrefetchScalarGridSpec(
            num_scalar_prefetch=0,
            grid=(G,),
            in_specs=[
                pl.BlockSpec((R, C), lambda i: (i, 0)),       # attn_mask
                pl.BlockSpec((R, E), lambda i: (i, 0)),       # x
                pl.BlockSpec((E, 3 * E), full2),              # wqkv_t (scaled)
                pl.BlockSpec((E, E), full2),                  # wo_t
                pl.BlockSpec((E, H), full2),                  # w1_t
                pl.BlockSpec((H, E), full2),                  # w2_t
                pl.BlockSpec((C, E), full2),                  # head_mask
                pl.BlockSpec((C, C), full2),                  # group_sum
                pl.BlockSpec((8, width), full2),              # packed vectors
            ],
            out_specs=pl.BlockSpec((R, E), lambda i: (i, 0)),
        ),
        compiler_params=pltpu.CompilerParams(
            dimension_semantics=("parallel",),
        ),
    )(
        attn_mask, x2d, wqkv_t,
        params["wo_t"], params["w1_t"], params["w2_t"],
        head_mask, group_sum, vec,
    )
    return out2d.reshape(B, S, E)


# ---------------- pure-JAX reference (for correctness check) -----------------
def encoder_block_ref(x, src_mask_bool, params):
    B, S, E = x.shape
    dh = E // N_HEADS
    qkv = x @ params["wqkv_t"] + params["bqkv"]           # (B, S, 3E)
    q, k, v = qkv[..., :E], qkv[..., E:2 * E], qkv[..., 2 * E:]

    def split_heads(t):
        return t.reshape(B, S, N_HEADS, dh).transpose(0, 2, 1, 3)  # (B, H, S, dh)

    qh, kh, vh = split_heads(q), split_heads(k), split_heads(v)
    scores = jnp.einsum("bhqd,bhkd->bhqk", qh, kh) / math.sqrt(dh)
    neg = src_mask_bool.astype(jnp.float32)[:, None, None, :] * NEG_INF
    scores = scores + neg
    p = jax.nn.softmax(scores, axis=-1)
    attn = jnp.einsum("bhqk,bhkd->bhqd", p, vh)
    attn = attn.transpose(0, 2, 1, 3).reshape(B, S, E)
    attn = attn @ params["wo_t"] + params["bo"]

    def layer_norm(t, g, b):
        mu = jnp.mean(t, axis=-1, keepdims=True)
        var = jnp.mean((t - mu) ** 2, axis=-1, keepdims=True)
        return (t - mu) / jnp.sqrt(var + LN_EPS) * g + b

    res1 = attn + x
    n1 = layer_norm(res1, params["gamma1"], params["beta1"])
    h1 = jnp.maximum(n1 @ params["w1_t"] + params["bf1"], 0.0)
    ff = h1 @ params["w2_t"] + params["bf2"]
    res2 = ff + n1
    return layer_norm(res2, params["gamma2"], params["beta2"])


# ---------------- main --------------------------------------------------------
if __name__ == "__main__":
    key = jax.random.PRNGKey(0)
    kx, kw = jax.random.split(key)
    ks = jax.random.split(kw, 8)

    x = jax.random.normal(kx, (BATCH, SEQ, EMBED), dtype=jnp.float32)

    # key_padding_mask: True == ignore this key position (pad last 2 of batch 1)
    src_mask = jnp.zeros((BATCH, SEQ), dtype=bool).at[1, -2:].set(True)

    s = 0.1
    params = {
        # attention in-proj (PyTorch stores (3E, E); we keep the transposed form)
        "wqkv_t": s * jax.random.normal(ks[0], (EMBED, 3 * EMBED), jnp.float32),
        "bqkv":   s * jax.random.normal(ks[1], (1, 3 * EMBED), jnp.float32),
        "wo_t":   s * jax.random.normal(ks[2], (EMBED, EMBED), jnp.float32),
        "bo":     s * jax.random.normal(ks[3], (1, EMBED), jnp.float32),
        "gamma1": jnp.ones((1, EMBED), jnp.float32),
        "beta1":  jnp.zeros((1, EMBED), jnp.float32),
        "w1_t":   s * jax.random.normal(ks[4], (EMBED, HIDDEN), jnp.float32),
        "bf1":    s * jax.random.normal(ks[5], (1, HIDDEN), jnp.float32),
        "w2_t":   s * jax.random.normal(ks[6], (HIDDEN, EMBED), jnp.float32),
        "bf2":    s * jax.random.normal(ks[7], (1, EMBED), jnp.float32),
        "gamma2": jnp.ones((1, EMBED), jnp.float32),
        "beta2":  jnp.zeros((1, EMBED), jnp.float32),
    }

    out = encoder_block(x, src_mask, params)
    out = jax.block_until_ready(out)

    ref = encoder_block_ref(x, src_mask, params)
    assert out.shape == (BATCH, SEQ, EMBED)
    # The approximate reciprocal is gone (exact division).  The tolerance is
    # kept conservative only because the kernel and the XLA reference may use
    # different f32 matmul pass decompositions under default precision; with
    # both at lax.Precision.HIGHEST the agreement is ~1e-5.
    assert jnp.allclose(out, ref, atol=2e-3, rtol=2e-3), (
        f"max abs diff {jnp.max(jnp.abs(out - ref))}"
    )

    print("KERNEL_OK")
</pallas_src>

<mosaic_0001>
module attributes {stable_mosaic.version = 11 : i64} {
  func.func @_encoder_block_kernel(%arg0: i32, %arg1: memref<16x128xf32, #tpu.memory_space<vmem>>, %arg2: memref<16x64xf32, #tpu.memory_space<vmem>>, %arg3: memref<64x192xf32, #tpu.memory_space<vmem>>, %arg4: memref<64x64xf32, #tpu.memory_space<vmem>>, %arg5: memref<64x256xf32, #tpu.memory_space<vmem>>, %arg6: memref<256x64xf32, #tpu.memory_space<vmem>>, %arg7: memref<128x64xf32, #tpu.memory_space<vmem>>, %arg8: memref<128x128xf32, #tpu.memory_space<vmem>>, %arg9: memref<8x256xf32, #tpu.memory_space<vmem>>, %arg10: memref<16x64xf32, #tpu.memory_space<vmem>>) attributes {dimension_semantics = [#tpu.dimension_semantics<parallel>], iteration_bounds = array<i64: 1>, scalar_prefetch = 0 : i64, scratch_operands = 0 : i64, tpu.core_type = #tpu.core_type<tc>, window_params = [{transform_indices = @transform_0, window_bounds = array<i64: 16, 128>}, {transform_indices = @transform_1, window_bounds = array<i64: 16, 64>}, {pipeline_mode = #tpu.pipeline_mode<synchronous>, transform_indices = @transform_2, window_bounds = array<i64: 64, 192>}, {pipeline_mode = #tpu.pipeline_mode<synchronous>, transform_indices = @transform_3, window_bounds = array<i64: 64, 64>}, {pipeline_mode = #tpu.pipeline_mode<synchronous>, transform_indices = @transform_4, window_bounds = array<i64: 64, 256>}, {pipeline_mode = #tpu.pipeline_mode<synchronous>, transform_indices = @transform_5, window_bounds = array<i64: 256, 64>}, {pipeline_mode = #tpu.pipeline_mode<synchronous>, transform_indices = @transform_6, window_bounds = array<i64: 128, 64>}, {pipeline_mode = #tpu.pipeline_mode<synchronous>, transform_indices = @transform_7, window_bounds = array<i64: 128, 128>}, {pipeline_mode = #tpu.pipeline_mode<synchronous>, transform_indices = @transform_8, window_bounds = array<i64: 8, 256>}, {transform_indices = @transform_9, window_bounds = array<i64: 16, 64>}]} {
    %c0 = arith.constant 0 : index
    %c0_0 = arith.constant 0 : index
    %0 = vector.load %arg2[%c0, %c0_0] : memref<16x64xf32, #tpu.memory_space<vmem>>, vector<16x64xf32>
    %c0_1 = arith.constant 0 : index
    %c0_2 = arith.constant 0 : index
    %1 = vector.load %arg9[%c0_1, %c0_2] : memref<8x256xf32, #tpu.memory_space<vmem>>, vector<8x256xf32>
    %2 = vector.extract_strided_slice %1 {offsets = [0, 0], sizes = [1, 192], strides = [1, 1]} : vector<8x256xf32> to vector<1x192xf32>
    %3 = vector.extract_strided_slice %1 {offsets = [1, 0], sizes = [1, 64], strides = [1, 1]} : vector<8x256xf32> to vector<1x64xf32>
    %4 = vector.extract_strided_slice %1 {offsets = [2, 0], sizes = [1, 64], strides = [1, 1]} : vector<8x256xf32> to vector<1x64xf32>
    %5 = vector.extract_strided_slice %1 {offsets = [3, 0], sizes = [1, 64], strides = [1, 1]} : vector<8x256xf32> to vector<1x64xf32>
    %6 = vector.extract_strided_slice %1 {offsets = [4, 0], sizes = [1, 256], strides = [1, 1]} : vector<8x256xf32> to vector<1x256xf32>
    %7 = vector.extract_strided_slice %1 {offsets = [5, 0], sizes = [1, 64], strides = [1, 1]} : vector<8x256xf32> to vector<1x64xf32>
    %8 = vector.extract_strided_slice %1 {offsets = [6, 0], sizes = [1, 64], strides = [1, 1]} : vector<8x256xf32> to vector<1x64xf32>
    %9 = vector.extract_strided_slice %1 {offsets = [7, 0], sizes = [1, 64], strides = [1, 1]} : vector<8x256xf32> to vector<1x64xf32>
    %c0_3 = arith.constant 0 : index
    %c0_4 = arith.constant 0 : index
    %10 = vector.load %arg3[%c0_3, %c0_4] : memref<64x192xf32, #tpu.memory_space<vmem>>, vector<64x192xf32>
    %cst = arith.constant dense<0.000000e+00> : vector<16x192xf32>
    %11 = tpu.matmul %0, %10, %cst {dimension_numbers = #tpu.dot_dimension_numbers<[1], [0], [0], [1], [0, 0, 1, 1], [], []>} : vector<16x64xf32>, vector<64x192xf32>, vector<16x192xf32> -> vector<16x192xf32>
    %12 = vector.broadcast %2 : vector<1x192xf32> to vector<16x192xf32>
    %13 = arith.addf %11, %12 : vector<16x192xf32>
    %14 = vector.extract_strided_slice %13 {offsets = [0, 0], sizes = [16, 64], strides = [1, 1]} : vector<16x192xf32> to vector<16x64xf32>
    %15 = vector.extract_strided_slice %13 {offsets = [0, 64], sizes = [16, 64], strides = [1, 1]} : vector<16x192xf32> to vector<16x64xf32>
    %16 = vector.extract_strided_slice %13 {offsets = [0, 128], sizes = [16, 64], strides = [1, 1]} : vector<16x192xf32> to vector<16x64xf32>
    %c0_5 = arith.constant 0 : index
    %c0_6 = arith.constant 0 : index
    %17 = vector.load %arg7[%c0_5, %c0_6] : memref<128x64xf32, #tpu.memory_space<vmem>>, vector<128x64xf32>
    %18 = tpu.concatenate %15, %15, %15, %15, %15, %15, %15, %15 in 0 : vector<16x64xf32>, vector<16x64xf32>, vector<16x64xf32>, vector<16x64xf32>, vector<16x64xf32>, vector<16x64xf32>, vector<16x64xf32>, vector<16x64xf32> -> vector<128x64xf32>
    %19 = arith.mulf %18, %17 : vector<128x64xf32>
    %20 = tpu.concatenate %16, %16, %16, %16, %16, %16, %16, %16 in 0 : vector<16x64xf32>, vector<16x64xf32>, vector<16x64xf32>, vector<16x64xf32>, vector<16x64xf32>, vector<16x64xf32>, vector<16x64xf32>, vector<16x64xf32> -> vector<128x64xf32>
    %21 = arith.mulf %20, %17 : vector<128x64xf32>
    %cst_7 = arith.constant dense<0.000000e+00> : vector<16x128xf32>
    %22 = tpu.matmul %14, %19, %cst_7 {dimension_numbers = #tpu.dot_dimension_numbers<[1], [1], [0], [0], [0, 0, 1, 0], [], []>} : vector<16x64xf32>, vector<128x64xf32>, vector<16x128xf32> -> vector<16x128xf32>
    %c0_8 = arith.constant 0 : index
    %c0_9 = arith.constant 0 : index
    %23 = vector.load %arg1[%c0_8, %c0_9] : memref<16x128xf32, #tpu.memory_space<vmem>>, vector<16x128xf32>
    %24 = arith.addf %22, %23 : vector<16x128xf32>
    %cst_10 = arith.constant dense<0xFF800000> : vector<16xf32>
    %25 = vector.multi_reduction <maximumf>, %24, %cst_10 [1] : vector<16x128xf32> to vector<16xf32>
    %26 = vector.shape_cast %25 : vector<16xf32> to vector<16x1xf32>
    %27 = vector.broadcast %26 : vector<16x1xf32> to vector<16x128xf32>
    %28 = arith.subf %24, %27 : vector<16x128xf32>
    %29 = math.exp %28 : vector<16x128xf32>
    %c0_11 = arith.constant 0 : index
    %c0_12 = arith.constant 0 : index
    %30 = vector.load %arg8[%c0_11, %c0_12] : memref<128x128xf32, #tpu.memory_space<vmem>>, vector<128x128xf32>
    %cst_13 = arith.constant dense<0.000000e+00> : vector<16x128xf32>
    %31 = tpu.matmul %29, %30, %cst_13 {dimension_numbers = #tpu.dot_dimension_numbers<[1], [0], [0], [1], [0, 0, 1, 1], [], []>} : vector<16x128xf32>, vector<128x128xf32>, vector<16x128xf32> -> vector<16x128xf32>
    %32 = arith.divf %29, %31 : vector<16x128xf32>
    %cst_14 = arith.constant dense<0.000000e+00> : vector<16x64xf32>
    %33 = tpu.matmul %32, %21, %cst_14 {dimension_numbers = #tpu.dot_dimension_numbers<[1], [0], [0], [1], [0, 0, 1, 1], [], []>} : vector<16x128xf32>, vector<128x64xf32>, vector<16x64xf32> -> vector<16x64xf32>
    %c0_15 = arith.constant 0 : index
    %c0_16 = arith.constant 0 : index
    %34 = vector.load %arg4[%c0_15, %c0_16] : memref<64x64xf32, #tpu.memory_space<vmem>>, vector<64x64xf32>
    %cst_17 = arith.constant dense<0.000000e+00> : vector<16x64xf32>
    %35 = tpu.matmul %33, %34, %cst_17 {dimension_numbers = #tpu.dot_dimension_numbers<[1], [0], [0], [1], [0, 0, 1, 1], [], []>} : vector<16x64xf32>, vector<64x64xf32>, vector<16x64xf32> -> vector<16x64xf32>
    %36 = vector.broadcast %3 : vector<1x64xf32> to vector<16x64xf32>
    %37 = arith.addf %35, %36 : vector<16x64xf32>
    %38 = arith.addf %37, %0 : vector<16x64xf32>
    %cst_18 = arith.constant dense<0.000000e+00> : vector<16xf32>
    %39 = vector.multi_reduction <add>, %38, %cst_18 [1] : vector<16x64xf32> to vector<16xf32>
    %40 = vector.shape_cast %39 : vector<16xf32> to vector<16x1xf32>
    %cst_19 = arith.constant 6.400000e+01 : f32
    %41 = vector.broadcast %cst_19 : f32 to vector<16x1xf32>
    %42 = arith.divf %40, %41 : vector<16x1xf32>
    %43 = vector.broadcast %42 : vector<16x1xf32> to vector<16x64xf32>
    %44 = arith.subf %38, %43 : vector<16x64xf32>
    %45 = vector.broadcast %42 : vector<16x1xf32> to vector<16x64xf32>
    %46 = arith.subf %38, %45 : vector<16x64xf32>
    %47 = arith.mulf %44, %46 : vector<16x64xf32>
    %cst_20 = arith.constant dense<0.000000e+00> : vector<16xf32>
    %48 = vector.multi_reduction <add>, %47, %cst_20 [1] : vector<16x64xf32> to vector<16xf32>
    %49 = vector.shape_cast %48 : vector<16xf32> to vector<16x1xf32>
    %cst_21 = arith.constant 6.400000e+01 : f32
    %50 = vector.broadcast %cst_21 : f32 to vector<16x1xf32>
    %51 = arith.divf %49, %50 : vector<16x1xf32>
    %52 = vector.broadcast %42 : vector<16x1xf32> to vector<16x64xf32>
    %53 = arith.subf %38, %52 : vector<16x64xf32>
    %cst_22 = arith.constant 9.99999974E-6 : f32
    %54 = vector.broadcast %cst_22 : f32 to vector<16x1xf32>
    %55 = arith.addf %51, %54 : vector<16x1xf32>
    %56 = math.rsqrt %55 : vector<16x1xf32>
    %57 = vector.broadcast %56 : vector<16x1xf32> to vector<16x64xf32>
    %58 = arith.mulf %53, %57 : vector<16x64xf32>
    %59 = vector.broadcast %4 : vector<1x64xf32> to vector<16x64xf32>
    %60 = arith.mulf %58, %59 : vector<16x64xf32>
    %61 = vector.broadcast %5 : vector<1x64xf32> to vector<16x64xf32>
    %62 = arith.addf %60, %61 : vector<16x64xf32>
    %c0_23 = arith.constant 0 : index
    %c0_24 = arith.constant 0 : index
    %63 = vector.load %arg5[%c0_23, %c0_24] : memref<64x256xf32, #tpu.memory_space<vmem>>, vector<64x256xf32>
    %cst_25 = arith.constant dense<0.000000e+00> : vector<16x256xf32>
    %64 = tpu.matmul %62, %63, %cst_25 {dimension_numbers = #tpu.dot_dimension_numbers<[1], [0], [0], [1], [0, 0, 1, 1], [], []>} : vector<16x64xf32>, vector<64x256xf32>, vector<16x256xf32> -> vector<16x256xf32>
    %65 = vector.broadcast %6 : vector<1x256xf32> to vector<16x256xf32>
    %66 = arith.addf %64, %65 : vector<16x256xf32>
    %cst_26 = arith.constant 0.000000e+00 : f32
    %67 = vector.broadcast %cst_26 : f32 to vector<16x256xf32>
    %68 = arith.maximumf %66, %67 : vector<16x256xf32>
    %c0_27 = arith.constant 0 : index
    %c0_28 = arith.constant 0 : index
    %69 = vector.load %arg6[%c0_27, %c0_28] : memref<256x64xf32, #tpu.memory_space<vmem>>, vector<256x64xf32>
    %cst_29 = arith.constant dense<0.000000e+00> : vector<16x64xf32>
    %70 = tpu.matmul %68, %69, %cst_29 {dimension_numbers = #tpu.dot_dimension_numbers<[1], [0], [0], [1], [0, 0, 1, 1], [], []>} : vector<16x256xf32>, vector<256x64xf32>, vector<16x64xf32> -> vector<16x64xf32>
    %71 = vector.broadcast %7 : vector<1x64xf32> to vector<16x64xf32>
    %72 = arith.addf %70, %71 : vector<16x64xf32>
    %73 = arith.addf %72, %62 : vector<16x64xf32>
    %cst_30 = arith.constant dense<0.000000e+00> : vector<16xf32>
    %74 = vector.multi_reduction <add>, %73, %cst_30 [1] : vector<16x64xf32> to vector<16xf32>
    %75 = vector.shape_cast %74 : vector<16xf32> to vector<16x1xf32>
    %cst_31 = arith.constant 6.400000e+01 : f32
    %76 = vector.broadcast %cst_31 : f32 to vector<16x1xf32>
    %77 = arith.divf %75, %76 : vector<16x1xf32>
    %78 = vector.broadcast %77 : vector<16x1xf32> to vector<16x64xf32>
    %79 = arith.subf %73, %78 : vector<16x64xf32>
    %80 = vector.broadcast %77 : vector<16x1xf32> to vector<16x64xf32>
    %81 = arith.subf %73, %80 : vector<16x64xf32>
    %82 = arith.mulf %79, %81 : vector<16x64xf32>
    %cst_32 = arith.constant dense<0.000000e+00> : vector<16xf32>
    %83 = vector.multi_reduction <add>, %82, %cst_32 [1] : vector<16x64xf32> to vector<16xf32>
    %84 = vector.shape_cast %83 : vector<16xf32> to vector<16x1xf32>
    %cst_33 = arith.constant 6.400000e+01 : f32
    %85 = vector.broadcast %cst_33 : f32 to vector<16x1xf32>
    %86 = arith.divf %84, %85 : vector<16x1xf32>
    %87 = vector.broadcast %77 : vector<16x1xf32> to vector<16x64xf32>
    %88 = arith.subf %73, %87 : vector<16x64xf32>
    %cst_34 = arith.constant 9.99999974E-6 : f32
    %89 = vector.broadcast %cst_34 : f32 to vector<16x1xf32>
    %90 = arith.addf %86, %89 : vector<16x1xf32>
    %91 = math.rsqrt %90 : vector<16x1xf32>
    %92 = vector.broadcast %91 : vector<16x1xf32> to vector<16x64xf32>
    %93 = arith.mulf %88, %92 : vector<16x64xf32>
    %94 = vector.broadcast %8 : vector<1x64xf32> to vector<16x64xf32>
    %95 = arith.mulf %93, %94 : vector<16x64xf32>
    %96 = vector.broadcast %9 : vector<1x64xf32> to vector<16x64xf32>
    %97 = arith.addf %95, %96 : vector<16x64xf32>
    %c0_35 = arith.constant 0 : index
    %c0_36 = arith.constant 0 : index
    %98 = vector.load %arg10[%c0_35, %c0_36] : memref<16x64xf32, #tpu.memory_space<vmem>>, vector<16x64xf32>
    tpu.vector_store %arg10[%c0_35, %c0_36], %97 {strides = array<i32>} : memref<16x64xf32, #tpu.memory_space<vmem>>, vector<16x64xf32>,
    return
  }
  func.func @transform_0(%arg0: i32) -> (i32, i32) {
    %c0_i32 = arith.constant 0 : i32
    %c0_i32_0 = arith.constant 0 : i32
    return %arg0, %c0_i32 : i32, i32
  }
  func.func @transform_1(%arg0: i32) -> (i32, i32) {
    %c0_i32 = arith.constant 0 : i32
    %c0_i32_0 = arith.constant 0 : i32
    return %arg0, %c0_i32 : i32, i32
  }
  func.func @transform_2(%arg0: i32) -> (i32, i32) {
    %c0_i32 = arith.constant 0 : i32
    %c0_i32_0 = arith.constant 0 : i32
    %c0_i32_1 = arith.constant 0 : i32
    return %c0_i32, %c0_i32_0 : i32, i32
  }
  func.func @transform_3(%arg0: i32) -> (i32, i32) {
    %c0_i32 = arith.constant 0 : i32
    %c0_i32_0 = arith.constant 0 : i32
    %c0_i32_1 = arith.constant 0 : i32
    return %c0_i32, %c0_i32_0 : i32, i32
  }
  func.func @transform_4(%arg0: i32) -> (i32, i32) {
    %c0_i32 = arith.constant 0 : i32
    %c0_i32_0 = arith.constant 0 : i32
    %c0_i32_1 = arith.constant 0 : i32
    return %c0_i32, %c0_i32_0 : i32, i32
  }
  func.func @transform_5(%arg0: i32) -> (i32, i32) {
    %c0_i32 = arith.constant 0 : i32
    %c0_i32_0 = arith.constant 0 : i32
    %c0_i32_1 = arith.constant 0 : i32
    return %c0_i32, %c0_i32_0 : i32, i32
  }
  func.func @transform_6(%arg0: i32) -> (i32, i32) {
    %c0_i32 = arith.constant 0 : i32
    %c0_i32_0 = arith.constant 0 : i32
    %c0_i32_1 = arith.constant 0 : i32
    return %c0_i32, %c0_i32_0 : i32, i32
  }
  func.func @transform_7(%arg0: i32) -> (i32, i32) {
    %c0_i32 = arith.constant 0 : i32
    %c0_i32_0 = arith.constant 0 : i32
    %c0_i32_1 = arith.constant 0 : i32
    return %c0_i32, %c0_i32_0 : i32, i32
  }
  func.func @transform_8(%arg0: i32) -> (i32, i32) {
    %c0_i32 = arith.constant 0 : i32
    %c0_i32_0 = arith.constant 0 : i32
    %c0_i32_1 = arith.constant 0 : i32
    return %c0_i32, %c0_i32_0 : i32, i32
  }
  func.func @transform_9(%arg0: i32) -> (i32, i32) {
    %c0_i32 = arith.constant 0 : i32
    %c0_i32_0 = arith.constant 0 : i32
    return %arg0, %c0_i32 : i32, i32
  }
}

</mosaic_0001>

<bundles_post_ra>
// kernel: tpu_custom_call.1
= control target key start
LH: loop header
LB: loop body
LE: loop exit
PB: predicated region body
PF: predicated region fallthrough
CT: control target
= control target key end

     0   :  { %14 = vsyncpa [#allocation3], 0  ;;  %s2041_s0 = inlined_call_operand.hbm [shape: f32[16,128], index: 0, kind: input, shape index: {}]   ;;  %s2042_s1 = inlined_call_operand.hbm [shape: f32[16,64], index: 1, kind: input, shape index: {}]   ;;  %s2043_s2 = inlined_call_operand.vmem [shape: f32[64,192], index: 2, kind: input, shape index: {}]   ;;  %s2044_s3 = inlined_call_operand.vmem [shape: f32[64,64], index: 3, kind: input, shape index: {}]   ;;  %s2045_s4 = inlined_call_operand.vmem [shape: f32[64,256], index: 4, kind: input, shape index: {}]   ;;  %s2046_s5 = inlined_call_operand.vmem [shape: f32[256,64], index: 5, kind: input, shape index: {}]   ;;  %s2047_s6 = inlined_call_operand.vmem [shape: f32[128,64], index: 6, kind: input, shape index: {}]   ;;  %s2048_s7 = inlined_call_operand.vmem [shape: f32[128,128], index: 7, kind: input, shape index: {}]   ;;  %s2049_s8 = inlined_call_operand.hbm [shape: f32[8,256], index: 8, kind: input, shape index: {}]   ;;  %s2050_s9 = inlined_call_operand.hbm [shape: f32[16,64], index: 9, kind: output, shape index: {}]  }
   0x1   :  { %15 = vsyncpa [#allocation6], 0 }
   0x2   :  { %16 = vsyncpa [#allocation4], 0  ;;  %s1415_s30 = smov [#allocation5]   ;;  %s1416_s11 = smov [#allocation2]  }
   0x3   :  { %s34_s10 = sshll.u32 %s1415_s30, 4  ;;  %s22_s12 = sshll.u32 %s1416_s11, 4  ;;  %s35_s10 = int_to_ptr.vmem [resolvable:$true] %s34_s10  ;;  %s23_s12 = int_to_ptr.vmem [resolvable:$true] %s22_s12 }
   0x4   :  { %s1337_s13 = scalar_lea.vmem %s35_s10, 256  ;;  %p1342_p1 = scmp.lt.s32.totalorder %s35_s10, %s35_s10 }
   0x5   :  { %p1338_p0 = scmp.ne.s32.totalorder %s35_s10, %s1337_s13  ;;  %p1343_p2 = scmp.lt.s32.totalorder %s1337_s13, %s1337_s13 }
   0x7   :  { %p1344_p3 = por %p1343_p2, %p1342_p1 }
   0x9   :  { %p1345_p4 = pnand %p1344_p3, %p1338_p0 }
   0xb   :  { %1348 = shalt.err (!%p1345_p4)
}
   0xc   :  { %s1417_s14 = smov 128   ;;  %s1418_s15 = smov 8  }
   0xd   :  { %40 = dma.hbm_to_vmem [thread:$0]  %s2042_s1, 256, %s35_s10, [#allocation6], %s1417_s14, %s1417_s14, %s1418_s15  }
   0xe   :  { %s1357_s18 = scalar_lea.vmem %s23_s12, 256  ;;  %p1362_p6 = scmp.lt.s32.totalorder %s23_s12, %s23_s12 }
   0xf   :  { %p1358_p5 = scmp.ne.s32.totalorder %s23_s12, %s1357_s18  ;;  %p1363_p7 = scmp.lt.s32.totalorder %s1357_s18, %s1357_s18 }
  0x11   :  { %p1364_p8 = por %p1363_p7, %p1362_p6 }
  0x13   :  { %p1365_p9 = pnand %p1364_p8, %p1358_p5 }
  0x15   :  { %1368 = shalt.err (!%p1365_p9)
}
  0x16   :  { %28 = dma.hbm_to_vmem [thread:$0]  %s2041_s0, 256, %s23_s12, [#allocation3], %s1417_s14, %s1417_s14, %s1418_s15  }
  0x17   :  { %s1419_s21 = smov [#allocation7]  }
  0x18   :  { %s59_s22 = sshll.u32 %s1419_s21, 4  ;;  %s60_s22 = int_to_ptr.vmem [resolvable:$true] %s59_s22 }
  0x19   :  { %s1377_s23 = scalar_lea.vmem %s60_s22, 256  ;;  %p1382_p11 = scmp.lt.s32.totalorder %s60_s22, %s60_s22 }
  0x1a   :  { %p1378_p10 = scmp.ne.s32.totalorder %s60_s22, %s1377_s23  ;;  %p1383_p12 = scmp.lt.s32.totalorder %s1377_s23, %s1377_s23 }
  0x1c   :  { %p1384_p13 = por %p1383_p12, %p1382_p11 }
  0x1e   :  { %p1385_p0 = pnand %p1384_p13, %p1378_p10 }
  0x20   :  { %1388 = shalt.err (!%p1385_p0)
}
  0x21   :  { %62 = dma.hbm_to_vmem [thread:$0]  %s2049_s8, 256, %s60_s22, [#allocation6]  }
  0x22   :  { %1409 = dma.done.wait [#allocation3], 256  }
  0x23   :  { %1410 = vsyncadd [#allocation3], 4294967040 }
  0x24   :  { %1411 = dma.done.wait [#allocation6], 512  }
  0x25   :  { %1412 = vsyncadd [#allocation6], 4294966784  ;;  %v1420_v0 = vmov 0.0   ;;  %v91_v1 = vld [vmem:[%s2043_s2 + $0x78] sm:$0xff]  ;;  %v90_v2 = vld [vmem:[%s2043_s2 + $0x70] sm:$0xff]  ;;  %s1421_s26 = smov 64   ;;  %v92_v51 = vlaneseq }
  0x26   :  { %171 = vmatprep.mubr.f32.mxu0 %v1420_v0  ;;  %v89_v3 = vld [vmem:[%s2043_s2 + $0x68] sm:$0xff]  ;;  %123 = vmatprep.subr.mxu0 %v91_v1  ;;  %v88_v4 = vld [vmem:[%s2043_s2 + $0x60] sm:$0xff]  ;;  %v87_v5 = vld [vmem:[%s2043_s2 + $0x58] sm:$0xff]  ;;  %vm100_vm0 = vcmask 523264  }
  0x27   :  { %124 = vmatpush1.msra.mxu0 %v90_v2  ;;  %v86_v6 = vld [vmem:[%s2043_s2 + $0x50] sm:$0xff]  ;;  %v85_v7 = vld [vmem:[%s2043_s2 + $0x48] sm:$0xff]  ;;  %v84_v8 = vld [vmem:[%s2043_s2 + $0x40] sm:$0xff]  ;;  %v1706_v53 = vshrl.u32 %v92_v51, 7 }
  0x28   :  { %125 = vmatprep.subr.mxu0 %v89_v3  ;;  %v83_v9 = vld [vmem:[%s2043_s2 + $0x38] sm:$0xff]  ;;  %v1519_v10 = vld [vmem:[%s2047_s6 + $0x68] sm:$0xff]  ;;  %v82_v12 = vld [vmem:[%s2043_s2 + $0x30] sm:$0xff] }
  0x29   :  { %126 = vmatpush1.msra.mxu0 %v88_v4  ;;  %v1524_v11 = vld [vmem:[%s2047_s6 + $0x78] sm:$0xff]  ;;  %242 = vrot.lane.b32.xlu1 %v1519_v10, %s1421_s26  ;;  %v81_v13 = vld [vmem:[%s2043_s2 + $0x28] sm:$0xff]  ;;  %v1539_v14 = vld [vmem:[%s2047_s6 + $0x60] sm:$0xff]  ;;  %v94_v56 = vsub.s32 0, %v1706_v53 }
  0x2a   :  { %127 = vmatprep.subr.mxu0 %v87_v5  ;;  %246 = vrot.lane.b32.xlu0 %v1524_v11, %s1421_s26  ;;  %v80_v15 = vld [vmem:[%s2043_s2 + $0x20] sm:$0xff]  ;;  %v1547_v16 = vld [vmem:[%s2047_s6 + $0x70] sm:$0xff]  ;;  %v79_v17 = vld [vmem:[%s2043_s2 + $0x18] sm:$0xff] }
  0x2b   :  { %128 = vmatpush1.msra.mxu0 %v86_v6  ;;  %v78_v18 = vld [vmem:[%s2043_s2 + $0x10] sm:$0xff]  ;;  %v77_v19 = vld [vmem:[%s2043_s2 + $0x8] sm:$0xff]  ;;  %v76_v21 = vld [vmem:[%s2043_s2] sm:$0xff] }
  0x2c   :  { %129 = vmatprep.subr.mxu0 %v85_v7  ;;  %v1565_v20 = vld [vmem:[%s2047_s6 + $0x50] sm:$0xff]  ;;  %v1573_v22 = vld [vmem:[%s2047_s6 + $0x58] sm:$0xff]  ;;  %v1587_v25 = vld [vmem:[%s2047_s6 + $0x40] sm:$0xff] }
  0x2d   :  { %130 = vmatpush1.msra.mxu0 %v84_v8  ;;  %240 = vrot.lane.b32.xlu1 %v1539_v14, %s1421_s26  ;;  %v1575_v23 = vld [vmem:[#allocation5] sm:$0xff]  ;;  %v484_v24 = vld [vmem:[%s2048_s7 + $0x78] sm:$0xff]  ;;  %v1597_v27 = vld [vmem:[%s2047_s6 + $0x48] sm:$0xff] }
  0x2e   :  { %131 = vmatprep.subr.mxu0 %v83_v9  ;;  %244 = vrot.lane.b32.xlu0 %v1547_v16, %s1421_s26  ;;  %v483_v26 = vld [vmem:[%s2048_s7 + $0x70] sm:$0xff]  ;;  %v1600_v28 = vld [vmem:[#allocation5 + $0x8] sm:$0xff]  ;;  %v482_v29 = vld [vmem:[%s2048_s7 + $0x68] sm:$0xff] }
  0x2f   :  { %132 = vmatpush1.msra.mxu0 %v82_v12  ;;  %v1612_v30 = vld [vmem:[%s2047_s6 + $0x30] sm:$0xff]  ;;  %v481_v31 = vld [vmem:[%s2048_s7 + $0x60] sm:$0xff]  ;;  %v1622_v32 = vld [vmem:[%s2047_s6 + $0x38] sm:$0xff] }
  0x30   :  { %133 = vmatprep.subr.mxu0 %v81_v13  ;;  %v480_v33 = vld [vmem:[%s2048_s7 + $0x58] sm:$0xff]  ;;  %v1634_v34 = vld [vmem:[%s2047_s6 + $0x20] sm:$0xff]  ;;  %v479_v35 = vld [vmem:[%s2048_s7 + $0x50] sm:$0xff] }
  0x31   :  { %134 = vmatpush1.msra.mxu0 %v80_v15  ;;  %236 = vrot.lane.b32.xlu1 %v1565_v20, %s1421_s26  ;;  %v1642_v36 = vld [vmem:[%s2047_s6 + $0x28] sm:$0xff]  ;;  %v1654_v38 = vld [vmem:[%s2047_s6 + $0x10] sm:$0xff]  ;;  %v477_v39 = vld [vmem:[%s2048_s7 + $0x40] sm:$0xff] }
  0x32   :  { %135 = vmatprep.subr.mxu0 %v79_v17  ;;  %238 = vrot.lane.b32.xlu0 %v1573_v22, %s1421_s26  ;;  %v478_v37 = vld [vmem:[%s2048_s7 + $0x48] sm:$0xff]  ;;  %v1662_v40 = vld [vmem:[%s2047_s6 + $0x18] sm:$0xff]  ;;  %v1674_v42 = vld [vmem:[%s2047_s6] sm:$0xff] }
  0x33   :  { %136 = vmatpush1.msra.mxu0 %v78_v18  ;;  %v476_v41 = vld [vmem:[%s2048_s7 + $0x38] sm:$0xff]  ;;  %v475_v43 = vld [vmem:[%s2048_s7 + $0x30] sm:$0xff]  ;;  %v1682_v44 = vld [vmem:[%s2047_s6 + $0x8] sm:$0xff] }
  0x34   :  { %137 = vmatprep.subr.mxu0 %v77_v19  ;;  %v474_v45 = vld [vmem:[%s2048_s7 + $0x28] sm:$0xff]  ;;  %v473_v46 = vld [vmem:[%s2048_s7 + $0x20] sm:$0xff]  ;;  %v472_v47 = vld [vmem:[%s2048_s7 + $0x18] sm:$0xff] }
  0x35   :  { %138 = vmatpush1.msra.mxu0 %v76_v21  ;;  %232 = vrot.lane.b32.xlu1 %v1587_v25, %s1421_s26  ;;  %v471_v48 = vld [vmem:[%s2048_s7 + $0x10] sm:$0xff]  ;;  %v470_v49 = vld [vmem:[%s2048_s7 + $0x8] sm:$0xff]  ;;  %v469_v50 = vld [vmem:[%s2048_s7] sm:$0xff] }
  0x36   :  { %1055 = vmatmul.mubr.msk.f32.vlgmr.msra.gmra.mxu0 %vm100_vm0, %v1575_v23  ;;  %1216 = vmatprep.subr.mxu0 %v484_v24  ;;  %v1709_v57 = vld [vmem:[#allocation7] sm:$0xff]  ;;  %v1711_v59 = vld [vmem:[#allocation7 + $0x8] sm:$0xff] }
  0x37   :  { %177 = vmatprep.mubr.f32.mxu0 %v1420_v0  ;;  %1217 = vmatpush3.msra.mxu0 %v484_v24  ;;  %v95_v60 = vrot.slane %v1709_v57, %v94_v56  ;;  %v99_v62 = vrot.slane %v1711_v59, %v94_v56 }
  0x38   :  { %1218 = vmatprep.subr.mxu0 %v483_v26  ;;  %234 = vrot.lane.b32.xlu0 %v1597_v27, %s1421_s26 }
  0x39   :  { %1219 = vmatpush3.msra.mxu0 %v483_v26  ;;  %228 = vrot.lane.b32.xlu1 %v1612_v30, %s1421_s26 }
  0x3a   :  { %1056 = vmatmul.mubr.msk.f32.gmra.mxu0 %vm100_vm0, %v1600_v28  ;;  %1220 = vmatprep.subr.mxu0 %v482_v29 }
  0x3b   :  { %1221 = vmatpush3.msra.mxu0 %v482_v29 }
  0x3c   :  { %1222 = vmatprep.subr.mxu0 %v481_v31  ;;  %230 = vrot.lane.b32.xlu0 %v1622_v32, %s1421_s26 }
  0x3d   :  { %1223 = vmatpush3.msra.mxu0 %v481_v31  ;;  %224 = vrot.lane.b32.xlu1 %v1634_v34, %s1421_s26 }
  0x3e   :  { %1224 = vmatprep.subr.mxu0 %v480_v33 }
  0x3f   :  { %1225 = vmatpush3.msra.mxu0 %v480_v33 }
  0x40   :  { %1226 = vmatprep.subr.mxu0 %v479_v35  ;;  %226 = vrot.lane.b32.xlu0 %v1642_v36, %s1421_s26 }
  0x41   :  { %1227 = vmatpush3.msra.mxu0 %v479_v35  ;;  %220 = vrot.lane.b32.xlu1 %v1654_v38, %s1421_s26 }
  0x42   :  { %1228 = vmatprep.subr.mxu0 %v478_v37 }
  0x43   :  { %1229 = vmatpush3.msra.mxu0 %v478_v37 }
  0x44   :  { %1230 = vmatprep.subr.mxu0 %v477_v39  ;;  %222 = vrot.lane.b32.xlu0 %v1662_v40, %s1421_s26 }
  0x45   :  { %1231 = vmatpush3.msra.mxu0 %v477_v39  ;;  %216 = vrot.lane.b32.xlu1 %v1674_v42, %s1421_s26 }
  0x46   :  { %1232 = vmatprep.subr.mxu0 %v476_v41 }
  0x47   :  { %1233 = vmatpush3.msra.mxu0 %v476_v41 }
  0x48   :  { %1234 = vmatprep.subr.mxu0 %v475_v43  ;;  %218 = vrot.lane.b32.xlu0 %v1682_v44, %s1421_s26 }
  0x49   :  { %1235 = vmatpush3.msra.mxu0 %v475_v43 }
  0x4a   :  { %1236 = vmatprep.subr.mxu0 %v474_v45 }
  0x4b   :  { %1237 = vmatpush3.msra.mxu0 %v474_v45 }
  0x4c   :  { %1238 = vmatprep.subr.mxu0 %v473_v46 }
  0x4d   :  { %1239 = vmatpush3.msra.mxu0 %v473_v46 }
  0x4e   :  { %1240 = vmatprep.subr.mxu0 %v472_v47 }
  0x4f   :  { %1241 = vmatpush3.msra.mxu0 %v472_v47 }
  0x50   :  { %1242 = vmatprep.subr.mxu0 %v471_v48 }
  0x51   :  { %1243 = vmatpush3.msra.mxu0 %v471_v48 }
  0x52   :  { %1244 = vmatprep.subr.mxu0 %v470_v49 }
  0x53   :  { %1245 = vmatpush3.msra.mxu0 %v470_v49 }
  0x54   :  { %1246 = vmatprep.subr.mxu0 %v469_v50 }
  0x55   :  { %1247 = vmatpush3.msra.mxu0 %v469_v50 }
  0x9b   :  { %v243_v52 = vpop.permute.xlu1 %242 }
  0x9c   :  { %v247_v54 = vpop.permute.xlu0 %246 }
  0x9f   :  { %v241_v55 = vpop.permute.xlu1 %240 }
  0xa0   :  { %v245_v58 = vpop.permute.xlu0 %244 }
  0xa3   :  { %v237_v61 = vpop.permute.xlu1 %236 }
  0xa4   :  { %v239_v2 = vpop.permute.xlu0 %238 }
  0xa7   :  { %v233_v6 = vpop.permute.xlu1 %232 }
  0xaa   :  { %v235_v17 = vpop.permute.xlu0 %234 }
  0xab   :  { %v229_v19 = vpop.permute.xlu1 %228 }
  0xae   :  { %v231_v26 = vpop.permute.xlu0 %230 }
  0xaf   :  { %v225_v33 = vpop.permute.xlu1 %224 }
  0xb2   :  { %v227_v37 = vpop.permute.xlu0 %226 }
  0xb3   :  { %v221_v39 = vpop.permute.xlu1 %220 }
  0xb6   :  { %v223_v45 = vpop.permute.xlu0 %222 }
  0xb7   :  { %v217_v48 = vpop.permute.xlu1 %216 }
  0xba   :  { %v219_v51 = vpop.permute.xlu0 %218 }
  0xf6   :  { %v173_v63 = vpop.f32.mrf.mxu0 }
  0xf7   :  { %v174_v1 = vadd.f32 %v173_v63, %v95_v60 }
  0xf8   :  { %v175_v3 = vpop.f32.mrf.mxu0 }
  0xf9   :  { %v1715_v4 = vadd.f32 %v175_v3, %v99_v62  ;;  %1213 = vmatprep.mubr.msk.f32.mxu1 %vm100_vm0, %v174_v1  ;;  %v278_v5 = vmul.f32 %v245_v58, %v174_v1  ;;  %v276_v15 = vmul.f32 %v241_v55, %v174_v1  ;;  %v274_v24 = vmul.f32 %v237_v61, %v174_v1 }
  0xfa   :  { %v179_v7 = vpop.f32.mrf.mxu0  ;;  %v272_v31 = vmul.f32 %v233_v6, %v174_v1  ;;  %v270_v35 = vmul.f32 %v229_v19, %v174_v1  ;;  %v268_v43 = vmul.f32 %v225_v33, %v174_v1  ;;  %v266_v47 = vmul.f32 %v221_v39, %v174_v1  ;;  %v296_v19 = vld [vmem:[#allocation2] sm:$0xff] }
  0xfb   :  { %v1718_v8 = vadd.f32 %v179_v7, %v95_v60  ;;  %342 = vrot.lane.b32.xlu1 %v278_v5, %s1421_s26  ;;  %v264_v49 = vmul.f32 %v217_v48, %v174_v1 }
  0xfc   :  { %v181_v9 = vpop.f32.mrf.mxu0 }
  0xfd   :  { %v1721_v12 = vadd.f32 %v181_v9, %v99_v62  ;;  %v279_v13 = vmul.f32 %v247_v54, %v1718_v8  ;;  %v277_v21 = vmul.f32 %v243_v52, %v1718_v8  ;;  %v275_v29 = vmul.f32 %v239_v2, %v1718_v8 }
  0xfe   :  { %v271_v41 = vmul.f32 %v231_v26, %v1718_v8  ;;  %v269_v46 = vmul.f32 %v227_v37, %v1718_v8  ;;  %v267_v50 = vmul.f32 %v223_v45, %v1718_v8  ;;  %v265_v52 = vmul.f32 %v219_v51, %v1718_v8 }
  0xff   :  { %344 = vrot.lane.b32.xlu0 %v279_v13, %s1421_s26  ;;  %338 = vrot.lane.b32.xlu1 %v276_v15, %s1421_s26  ;;  %v1728_v18 = vmul.f32 %v1524_v11, %v1721_v12  ;;  %v273_v11 = vmul.f32 %v235_v17, %v1718_v8  ;;  %v297_v15 = vld [vmem:[#allocation2 + $0x8] sm:$0xff]  ;;  %v292_v45 = vmul.f32 %v1539_v14, %v1715_v4 }
 0x100   :  { %v288_v14 = vmul.f32 %v1587_v25, %v1715_v4  ;;  %v284_v25 = vmul.f32 %v1634_v34, %v1715_v4  ;;  %v280_v34 = vmul.f32 %v1674_v42, %v1715_v4  ;;  %v643_v42 = vld [vmem:[%s2044_s3 + $0x20] sm:$0xff] }
 0x101   :  { %1251 = vmatprep.subr.mxu0 %v1728_v18 }
 0x103   :  { %340 = vrot.lane.b32.xlu0 %v277_v21, %s1421_s26  ;;  %334 = vrot.lane.b32.xlu1 %v274_v24, %s1421_s26 }
 0x107   :  { %336 = vrot.lane.b32.xlu0 %v275_v29, %s1421_s26  ;;  %330 = vrot.lane.b32.xlu1 %v272_v31, %s1421_s26 }
 0x10b   :  { %332 = vrot.lane.b32.xlu0 %v273_v11, %s1421_s26  ;;  %326 = vrot.lane.b32.xlu1 %v270_v35, %s1421_s26 }
 0x10f   :  { %328 = vrot.lane.b32.xlu0 %v271_v41, %s1421_s26  ;;  %322 = vrot.lane.b32.xlu1 %v268_v43, %s1421_s26  ;;  %v293_v43 = vmul.f32 %v1519_v10, %v1721_v12  ;;  %v289_v10 = vmul.f32 %v1597_v27, %v1721_v12  ;;  %v285_v27 = vmul.f32 %v1642_v36, %v1721_v12 }
 0x110   :  { %v281_v36 = vmul.f32 %v1682_v44, %v1721_v12  ;;  %v644_v44 = vld [vmem:[%s2044_s3 + $0x28] sm:$0xff] }
 0x113   :  { %324 = vrot.lane.b32.xlu0 %v269_v46, %s1421_s26  ;;  %318 = vrot.lane.b32.xlu1 %v266_v47, %s1421_s26  ;;  %v291_v46 = vmul.f32 %v1573_v22, %v1721_v12  ;;  %v287_v22 = vmul.f32 %v1622_v32, %v1721_v12  ;;  %v283_v32 = vmul.f32 %v1662_v40, %v1721_v12  ;;  %v646_v40 = vld [vmem:[%s2044_s3 + $0x38] sm:$0xff]  ;;  %v641_v12 = vld [vmem:[%s2044_s3 + $0x10] sm:$0xff] }
 0x117   :  { %320 = vrot.lane.b32.xlu0 %v267_v50, %s1421_s26  ;;  %314 = vrot.lane.b32.xlu1 %v264_v49, %s1421_s26 }
 0x11b   :  { %316 = vrot.lane.b32.xlu0 %v265_v52, %s1421_s26  ;;  %v640_v52 = vld [vmem:[%s2044_s3 + $0x8] sm:$0xff] }
 0x16d   :  { %v343_v55 = vpop.permute.xlu1 %342 }
 0x171   :  { %v345_v54 = vpop.permute.xlu0 %344  ;;  %v339_v58 = vpop.permute.xlu1 %338 }
 0x172   :  { %1181 = vmatprep.subr.msk.mxu1 %vm100_vm0, %v345_v54 }
 0x173   :  { %1182 = vmatpush3.xpose.msk.msra.mxu1 %vm100_vm0, %v345_v54  ;;  %v639_v54 = vld [vmem:[%s2044_s3] sm:$0xff] }
 0x174   :  { %1183 = vmatprep.subr.msk.mxu1 %vm100_vm0, %v343_v55 }
 0x175   :  { %v341_v56 = vpop.permute.xlu0 %340  ;;  %v335_v61 = vpop.permute.xlu1 %334 }
 0x177   :  { %1184 = vmatpush3.xpose.msk.msra.mxu1 %vm100_vm0, %v343_v55 }
 0x178   :  { %1185 = vmatprep.subr.msk.mxu1 %vm100_vm0, %v341_v56 }
 0x179   :  { %v337_v60 = vpop.permute.xlu0 %336  ;;  %v331_v63 = vpop.permute.xlu1 %330 }
 0x17b   :  { %1186 = vmatpush3.xpose.msk.msra.mxu1 %vm100_vm0, %v341_v56 }
 0x17c   :  { %1187 = vmatprep.subr.msk.mxu1 %vm100_vm0, %v339_v58 }
 0x17d   :  { %v333_v62 = vpop.permute.xlu0 %332  ;;  %v327_v2 = vpop.permute.xlu1 %326 }
 0x17f   :  { %1188 = vmatpush3.xpose.msk.msra.mxu1 %vm100_vm0, %v339_v58  ;;  %v649_v58 = vsub.s32 1, %v1706_v53 }
 0x180   :  { %1189 = vmatprep.subr.msk.mxu1 %vm100_vm0, %v337_v60 }
 0x181   :  { %v329_v1 = vpop.permute.xlu0 %328  ;;  %v323_v5 = vpop.permute.xlu1 %322 }
 0x183   :  { %1190 = vmatpush3.xpose.msk.msra.mxu1 %vm100_vm0, %v337_v60  ;;  %v650_v60 = vrot.slane %v1709_v57, %v649_v58 }
 0x184   :  { %1191 = vmatprep.subr.msk.mxu1 %vm100_vm0, %v335_v61 }
 0x185   :  { %v325_v3 = vpop.permute.xlu0 %324  ;;  %v319_v7 = vpop.permute.xlu1 %318 }
 0x187   :  { %1192 = vmatpush3.xpose.msk.msra.mxu1 %vm100_vm0, %v335_v61 }
 0x188   :  { %1193 = vmatprep.subr.msk.mxu1 %vm100_vm0, %v333_v62 }
 0x189   :  { %v321_v6 = vpop.permute.xlu0 %320  ;;  %v315_v13 = vpop.permute.xlu1 %314 }
 0x18b   :  { %1194 = vmatpush3.xpose.msk.msra.mxu1 %vm100_vm0, %v333_v62 }
 0x18c   :  { %1195 = vmatprep.subr.msk.mxu1 %vm100_vm0, %v331_v63 }
 0x18d   :  { %v317_v9 = vpop.permute.xlu0 %316 }
 0x18f   :  { %1196 = vmatpush3.xpose.msk.msra.mxu1 %vm100_vm0, %v331_v63 }
 0x190   :  { %1197 = vmatprep.subr.msk.mxu1 %vm100_vm0, %v329_v1 }
 0x193   :  { %1198 = vmatpush3.xpose.msk.msra.mxu1 %vm100_vm0, %v329_v1 }
 0x194   :  { %1199 = vmatprep.subr.msk.mxu1 %vm100_vm0, %v327_v2 }
 0x197   :  { %1200 = vmatpush3.xpose.msk.msra.mxu1 %vm100_vm0, %v327_v2 }
 0x198   :  { %1201 = vmatprep.subr.msk.mxu1 %vm100_vm0, %v325_v3 }
 0x19b   :  { %1202 = vmatpush3.xpose.msk.msra.mxu1 %vm100_vm0, %v325_v3 }
 0x19c   :  { %1203 = vmatprep.subr.msk.mxu1 %vm100_vm0, %v323_v5 }
 0x19f   :  { %1204 = vmatpush3.xpose.msk.msra.mxu1 %vm100_vm0, %v323_v5 }
 0x1a0   :  { %1205 = vmatprep.subr.msk.mxu1 %vm100_vm0, %v321_v6 }
 0x1a3   :  { %1206 = vmatpush3.xpose.msk.msra.mxu1 %vm100_vm0, %v321_v6 }
 0x1a4   :  { %1207 = vmatprep.subr.msk.mxu1 %vm100_vm0, %v319_v7 }
 0x1a7   :  { %1208 = vmatpush3.xpose.msk.msra.mxu1 %vm100_vm0, %v319_v7 }
 0x1a8   :  { %1209 = vmatprep.subr.msk.mxu1 %vm100_vm0, %v317_v9 }
 0x1ab   :  { %1210 = vmatpush3.xpose.msk.msra.mxu1 %vm100_vm0, %v317_v9 }
 0x1ac   :  { %1211 = vmatprep.subr.msk.mxu1 %vm100_vm0, %v315_v13 }
 0x1af   :  { %1212 = vmatpush3.xpose.msk.msra.mxu1 %vm100_vm0, %v315_v13 }
 0x1b0   :  { %1286 = vmatprep.subr.mxu1 %v646_v40 }
 0x1b2   :  { %1214 = vmatmul.mubr.msk.f32.vlgmr.msra.gmra.mxu1 %vm100_vm0, %v1718_v8  ;;  %v294_v8 = vmul.f32 %v1547_v16, %v1715_v4  ;;  %v290_v16 = vmul.f32 %v1565_v20, %v1715_v4  ;;  %v286_v20 = vmul.f32 %v1612_v30, %v1715_v4  ;;  %v282_v30 = vmul.f32 %v1654_v38, %v1715_v4  ;;  %v645_v38 = vld [vmem:[%s2044_s3 + $0x30] sm:$0xff]  ;;  %v642_v4 = vld [vmem:[%s2044_s3 + $0x18] sm:$0xff] }
 0x1b3   :  { %1287 = vmatpush3.msra.mxu1 %v646_v40  ;;  %v911_v40 = vld [vmem:[%s2046_s5 + $0xd8] sm:$0xff] }
 0x1b4   :  { %1288 = vmatprep.subr.mxu1 %v645_v38 }
 0x1b5   :  { %1289 = vmatpush3.msra.mxu1 %v645_v38  ;;  %v895_v38 = vld [vmem:[%s2046_s5 + $0x58] sm:$0xff] }
 0x1b6   :  { %1290 = vmatprep.subr.mxu1 %v644_v44 }
 0x1b7   :  { %1291 = vmatpush3.msra.mxu1 %v644_v44  ;;  %v910_v44 = vld [vmem:[%s2046_s5 + $0xd0] sm:$0xff] }
 0x1b8   :  { %1292 = vmatprep.subr.mxu1 %v643_v42 }
 0x1b9   :  { %1293 = vmatpush3.msra.mxu1 %v643_v42  ;;  %v894_v42 = vld [vmem:[%s2046_s5 + $0x50] sm:$0xff] }
 0x1ba   :  { %1294 = vmatprep.subr.mxu1 %v642_v4 }
 0x1bb   :  { %1295 = vmatpush3.msra.mxu1 %v642_v4  ;;  %v909_v4 = vld [vmem:[%s2046_s5 + $0xc8] sm:$0xff] }
 0x1bc   :  { %1296 = vmatprep.subr.mxu1 %v641_v12 }
 0x1bd   :  { %1297 = vmatpush3.msra.mxu1 %v641_v12  ;;  %v893_v12 = vld [vmem:[%s2046_s5 + $0x48] sm:$0xff] }
 0x1be   :  { %1298 = vmatprep.subr.mxu1 %v640_v52 }
 0x1bf   :  { %1299 = vmatpush3.msra.mxu1 %v640_v52  ;;  %v905_v52 = vld [vmem:[%s2046_s5 + $0xa8] sm:$0xff] }
 0x1c0   :  { %1300 = vmatprep.subr.mxu1 %v639_v54 }
 0x1c1   :  { %1301 = vmatpush3.msra.mxu1 %v639_v54  ;;  %v889_v54 = vld [vmem:[%s2046_s5 + $0x28] sm:$0xff] }
 0x272   :  { %v1215_v17 = vpop.f32.mrf.mxu1 }
 0x273   :  { %v456_v21 = vadd.f32 %v1215_v17, %v297_v15 }
 0x274   :  { %v450_v24 = vpop.f32.mrf.mxu1 }
 0x275   :  { %v451_v26 = vadd.f32 %v450_v24, %v296_v19  ;;  %461 = vmax.xlane.f32.xlu1 %v456_v21 }
 0x277   :  { %459 = vmax.xlane.f32.xlu0 %v451_v26 }
 0x2fe   :  { %v462_v29 = vpop.xlane.xlu1 %461 }
 0x2ff   :  { %v464_v31 = vsub.f32 %v456_v21, %v462_v29  ;;  %v787_v29 = vld [vmem:[%s2045_s4 + $0x70] sm:$0xff] }
 0x300   :  { %v460_v33 = vpop.xlane.xlu0 %459 }
 0x301   :  { %v463_v11 = vsub.f32 %v451_v26, %v460_v33  ;;  %v467_v35 = vmul.f32 1.442695, %v464_v31  ;;  %v788_v26 = vld [vmem:[%s2045_s4 + $0x78] sm:$0xff]  ;;  %v786_v31 = vld [vmem:[%s2045_s4 + $0x68] sm:$0xff]  ;;  %v785_v33 = vld [vmem:[%s2045_s4 + $0x60] sm:$0xff] }
 0x303   :  { %v465_v37 = vmul.f32 1.442695, %v463_v11  ;;  %v784_v11 = vld [vmem:[%s2045_s4 + $0x58] sm:$0xff] }
 0x305   :  { %1313 = vpow2.f32 %v465_v37  ;;  %v782_v37 = vld [vmem:[%s2045_s4 + $0x48] sm:$0xff] }
 0x306   :  { %1315 = vpow2.f32 %v467_v35  ;;  %v783_v35 = vld [vmem:[%s2045_s4 + $0x50] sm:$0xff] }
 0x312   :  { %v1785_v39 = vpop.eup %1313 }
 0x313   :  { %v1787_v41 = vpop.eup %1315  ;;  %1248 = vmatprep.mubr.f32.mxu0 %v1785_v39 }
 0x314   :  { %1249 = vmatmul.mubr.f32.vlgmr.msra.gmra.mxu0 %v1787_v41 }
 0x315   :  { %1252 = vmatpush3.msra.mxu0 %v1728_v18 }
 0x316   :  { %1253 = vmatprep.subr.mxu0 %v294_v8 }
 0x317   :  { %1254 = vmatpush3.msra.mxu0 %v294_v8  ;;  %v779_v8 = vld [vmem:[%s2045_s4 + $0x30] sm:$0xff] }
 0x318   :  { %1255 = vmatprep.subr.mxu0 %v293_v43 }
 0x319   :  { %1256 = vmatpush3.msra.mxu0 %v293_v43  ;;  %v778_v43 = vld [vmem:[%s2045_s4 + $0x28] sm:$0xff] }
 0x31a   :  { %1257 = vmatprep.subr.mxu0 %v292_v45 }
 0x31b   :  { %1258 = vmatpush3.msra.mxu0 %v292_v45  ;;  %v777_v45 = vld [vmem:[%s2045_s4 + $0x20] sm:$0xff] }
 0x31c   :  { %1259 = vmatprep.subr.mxu0 %v291_v46 }
 0x31d   :  { %1260 = vmatpush3.msra.mxu0 %v291_v46  ;;  %v776_v46 = vld [vmem:[%s2045_s4 + $0x18] sm:$0xff] }
 0x31e   :  { %1261 = vmatprep.subr.mxu0 %v290_v16 }
 0x31f   :  { %1262 = vmatpush3.msra.mxu0 %v290_v16  ;;  %v775_v16 = vld [vmem:[%s2045_s4 + $0x10] sm:$0xff] }
 0x320   :  { %1263 = vmatprep.subr.mxu0 %v289_v10 }
 0x321   :  { %1264 = vmatpush3.msra.mxu0 %v289_v10  ;;  %v774_v10 = vld [vmem:[%s2045_s4 + $0x8] sm:$0xff] }
 0x322   :  { %1265 = vmatprep.subr.mxu0 %v288_v14 }
 0x323   :  { %1266 = vmatpush3.msra.mxu0 %v288_v14  ;;  %v773_v14 = vld [vmem:[%s2045_s4] sm:$0xff] }
 0x324   :  { %1267 = vmatprep.subr.mxu0 %v287_v22 }
 0x325   :  { %1268 = vmatpush3.msra.mxu0 %v287_v22  ;;  %v915_v22 = vld [vmem:[%s2046_s5 + $0xf8] sm:$0xff] }
 0x326   :  { %1269 = vmatprep.subr.mxu0 %v286_v20  ;;  %1143 = vmatprep.subr.mxu1 %v915_v22 }
 0x327   :  { %1270 = vmatpush3.msra.mxu0 %v286_v20  ;;  %v899_v20 = vld [vmem:[%s2046_s5 + $0x78] sm:$0xff] }
 0x328   :  { %1271 = vmatprep.subr.mxu0 %v285_v27 }
 0x329   :  { %1272 = vmatpush3.msra.mxu0 %v285_v27  ;;  %v914_v27 = vld [vmem:[%s2046_s5 + $0xf0] sm:$0xff] }
 0x32a   :  { %1273 = vmatprep.subr.mxu0 %v284_v25 }
 0x32b   :  { %1274 = vmatpush3.msra.mxu0 %v284_v25  ;;  %v898_v25 = vld [vmem:[%s2046_s5 + $0x70] sm:$0xff] }
 0x32c   :  { %1275 = vmatprep.subr.mxu0 %v283_v32 }
 0x32d   :  { %1276 = vmatpush3.msra.mxu0 %v283_v32  ;;  %v913_v32 = vld [vmem:[%s2046_s5 + $0xe8] sm:$0xff] }
 0x32e   :  { %1277 = vmatprep.subr.mxu0 %v282_v30 }
 0x32f   :  { %1278 = vmatpush3.msra.mxu0 %v282_v30  ;;  %v897_v30 = vld [vmem:[%s2046_s5 + $0x68] sm:$0xff] }
 0x330   :  { %1279 = vmatprep.subr.mxu0 %v281_v36 }
 0x331   :  { %1280 = vmatpush3.msra.mxu0 %v281_v36  ;;  %v912_v36 = vld [vmem:[%s2046_s5 + $0xe0] sm:$0xff] }
 0x332   :  { %1281 = vmatprep.subr.mxu0 %v280_v34 }
 0x333   :  { %1282 = vmatpush3.msra.mxu0 %v280_v34  ;;  %v896_v34 = vld [vmem:[%s2046_s5 + $0x60] sm:$0xff] }
 0x334   :  { %819 = vmatprep.subr.mxu0 %v788_v26  ;;  %v903_v26 = vld [vmem:[%s2046_s5 + $0x98] sm:$0xff] }
 0x3d4   :  { %v1250_v18 = vpop.f32.mrf.mxu0 }
 0x3d5   :  { %1317 = vrcp.f32 %v1250_v18  ;;  %v908_v18 = vld [vmem:[%s2046_s5 + $0xc0] sm:$0xff] }
 0x3d6   :  { %v551_v47 = vpop.f32.mrf.mxu0 }
 0x3d7   :  { %1319 = vrcp.f32 %v551_v47  ;;  %v892_v47 = vld [vmem:[%s2046_s5 + $0x40] sm:$0xff] }
 0x3e2   :  { %v1318_v48 = vpop.eup %1317 }
 0x3e3   :  { %v563_v51 = vmul.f32 %v1318_v48, %v1787_v41  ;;  %v780_v41 = vld [vmem:[%s2045_s4 + $0x38] sm:$0xff] }
 0x3e4   :  { %v1320_v49 = vpop.eup %1319  ;;  %v907_v48 = vld [vmem:[%s2046_s5 + $0xb8] sm:$0xff] }
 0x3e5   :  { %v561_v50 = vmul.f32 %v1320_v49, %v1785_v39  ;;  %v781_v39 = vld [vmem:[%s2045_s4 + $0x40] sm:$0xff]  ;;  %v891_v49 = vld [vmem:[%s2046_s5 + $0x38] sm:$0xff] }
 0x3e7   :  { %1283 = vmatprep.mubr.f32.mxu0 %v561_v50  ;;  %v906_v50 = vld [vmem:[%s2046_s5 + $0xb0] sm:$0xff] }
 0x3e8   :  { %1284 = vmatmul.mubr.f32.vlgmr.msra.gmra.mxu0 %v563_v51  ;;  %v890_v51 = vld [vmem:[%s2046_s5 + $0x30] sm:$0xff] }
 0x3e9   :  { %867 = vmatprep.mubr.f32.mxu0 %v1420_v0  ;;  %820 = vmatpush1.msra.mxu0 %v787_v29  ;;  %v901_v29 = vld [vmem:[%s2046_s5 + $0x88] sm:$0xff] }
 0x3ea   :  { %821 = vmatprep.subr.mxu0 %v786_v31  ;;  %v885_v31 = vld [vmem:[%s2046_s5 + $0x8] sm:$0xff] }
 0x3eb   :  { %822 = vmatpush1.msra.mxu0 %v785_v33  ;;  %v900_v33 = vld [vmem:[%s2046_s5 + $0x80] sm:$0xff] }
 0x3ec   :  { %823 = vmatprep.subr.mxu0 %v784_v11  ;;  %v884_v11 = vld [vmem:[%s2046_s5] sm:$0xff] }
 0x3ed   :  { %824 = vmatpush1.msra.mxu0 %v783_v35  ;;  %v791_v35 = vsub.s32 4, %v1706_v53 }
 0x3ee   :  { %825 = vmatprep.subr.mxu0 %v782_v37 }
 0x3ef   :  { %826 = vmatpush1.msra.mxu0 %v781_v39  ;;  %v792_v37 = vrot.slane %v1709_v57, %v791_v35  ;;  %v796_v39 = vrot.slane %v1711_v59, %v791_v35 }
 0x3f0   :  { %827 = vmatprep.subr.mxu0 %v780_v41 }
 0x3f1   :  { %828 = vmatpush1.msra.mxu0 %v779_v8 }
 0x3f2   :  { %829 = vmatprep.subr.mxu0 %v778_v43 }
 0x3f3   :  { %830 = vmatpush1.msra.mxu0 %v777_v45 }
 0x3f4   :  { %831 = vmatprep.subr.mxu0 %v776_v46 }
 0x3f5   :  { %832 = vmatpush1.msra.mxu0 %v775_v16 }
 0x3f6   :  { %833 = vmatprep.subr.mxu0 %v774_v10 }
 0x3f7   :  { %834 = vmatpush1.msra.mxu0 %v773_v14 }
 0x4a8   :  { %v1285_v55 = vpop.f32.mrf.mxu0 }
 0x4aa   :  { %v630_v56 = vpop.f32.mrf.mxu0 }
 0x4ab   :  { %1302 = vmatprep.mubr.msk.f32.mxu1 %vm100_vm0, %v630_v56  ;;  %v888_v56 = vld [vmem:[%s2046_s5 + $0x20] sm:$0xff] }
 0x4ac   :  { %1303 = vmatmul.mubr.msk.f32.vlgmr.msra.gmra.mxu1 %vm100_vm0, %v1285_v55  ;;  %v904_v55 = vld [vmem:[%s2046_s5 + $0xa0] sm:$0xff] }
 0x4ad   :  { %1144 = vmatpush3.msra.mxu1 %v899_v20 }
 0x4ae   :  { %1145 = vmatprep.subr.mxu1 %v914_v27 }
 0x4af   :  { %1146 = vmatpush3.msra.mxu1 %v898_v25 }
 0x4b0   :  { %1147 = vmatprep.subr.mxu1 %v913_v32  ;;  %v918_v32 = vsub.s32 5, %v1706_v53 }
 0x4b1   :  { %1148 = vmatpush3.msra.mxu1 %v897_v30 }
 0x4b2   :  { %1149 = vmatprep.subr.mxu1 %v912_v36  ;;  %v919_v59 = vrot.slane %v1709_v57, %v918_v32 }
 0x4b3   :  { %1150 = vmatpush3.msra.mxu1 %v896_v34 }
 0x4b4   :  { %1151 = vmatprep.subr.mxu1 %v911_v40 }
 0x4b5   :  { %1152 = vmatpush3.msra.mxu1 %v895_v38 }
 0x4b6   :  { %1153 = vmatprep.subr.mxu1 %v910_v44 }
 0x4b7   :  { %1154 = vmatpush3.msra.mxu1 %v894_v42 }
 0x4b8   :  { %1155 = vmatprep.subr.mxu1 %v909_v4 }
 0x4b9   :  { %1156 = vmatpush3.msra.mxu1 %v893_v12 }
 0x4ba   :  { %1157 = vmatprep.subr.mxu1 %v908_v18 }
 0x4bb   :  { %1158 = vmatpush3.msra.mxu1 %v892_v47 }
 0x4bc   :  { %1159 = vmatprep.subr.mxu1 %v907_v48 }
 0x4bd   :  { %1160 = vmatpush3.msra.mxu1 %v891_v49 }
 0x4be   :  { %1161 = vmatprep.subr.mxu1 %v906_v50 }
 0x4bf   :  { %1162 = vmatpush3.msra.mxu1 %v890_v51 }
 0x4c0   :  { %1163 = vmatprep.subr.mxu1 %v905_v52 }
 0x4c1   :  { %1164 = vmatpush3.msra.mxu1 %v889_v54 }
 0x4c2   :  { %1165 = vmatprep.subr.mxu1 %v904_v55 }
 0x4c3   :  { %1166 = vmatpush3.msra.mxu1 %v888_v56 }
 0x4c4   :  { %1167 = vmatprep.subr.mxu1 %v903_v26 }
 0x56c   :  { %v1304_v61 = vpop.f32.mrf.mxu1 }
 0x56d   :  { %v729_v63 = vadd.f32 %v1304_v61, %v650_v60 }
 0x56e   :  { %v723_v62 = vpop.f32.mrf.mxu1 }
 0x56f   :  { %v724_v1 = vadd.f32 %v723_v62, %v650_v60  ;;  %v733_v5 = vadd.f32 %v729_v63, %v1600_v28 }
 0x571   :  { %v732_v2 = vadd.f32 %v724_v1, %v1575_v23  ;;  %v737_v6 = vsel %vm100_vm0, %v733_v5, 0.0 }
 0x573   :  { %v734_v3 = vsel %vm100_vm0, %v732_v2, 0.0 }
 0x574   :  { %735 = vadd.xlane.f32.xlu0 %v734_v3  ;;  %v769_v3 = vsub.s32 3, %v1706_v53 }
 0x578   :  { %738 = vadd.xlane.f32.xlu0 %v737_v6 }
 0x5fd   :  { %v736_v7 = vpop.xlane.xlu0 %735 }
 0x5fe   :  { %v741_v9 = vmul.f32 0.015625, %v736_v7 }
 0x600   :  { %v1857_v13 = vsub.f32 %v732_v2, %v741_v9  ;;  %v763_v2 = vsub.s32 2, %v1706_v53  ;;  %v770_v9 = vrot.slane %v1709_v57, %v769_v3 }
 0x601   :  { %v739_v15 = vpop.xlane.xlu0 %738 }
 0x602   :  { %v742_v17 = vmul.f32 0.015625, %v739_v15  ;;  %v745_v19 = vmul.f32 %v1857_v13, %v1857_v13 }
 0x604   :  { %v1861_v21 = vsub.f32 %v733_v5, %v742_v17  ;;  %v747_v23 = vsel %vm100_vm0, %v745_v19, 0.0  ;;  %v764_v5 = vrot.slane %v1709_v57, %v763_v2 }
 0x605   :  { %748 = vadd.xlane.f32.xlu1 %v747_v23 }
 0x606   :  { %v746_v28 = vmul.f32 %v1861_v21, %v1861_v21 }
 0x608   :  { %v750_v24 = vsel %vm100_vm0, %v746_v28, 0.0 }
 0x609   :  { %751 = vadd.xlane.f32.xlu0 %v750_v24 }
 0x68e   :  { %v749_v58 = vpop.xlane.xlu1 %748 }
 0x68f   :  { %v753_v60 = vmul.f32 0.015625, %v749_v58 }
 0x691   :  { %v755_v61 = vadd.f32 1e-05, %v753_v60 }
 0x692   :  { %v752_v62 = vpop.xlane.xlu0 %751 }
 0x693   :  { %1321 = vrsqrt.f32 %v755_v61  ;;  %v754_v63 = vmul.f32 0.015625, %v752_v62 }
 0x695   :  { %v756_v1 = vadd.f32 1e-05, %v754_v63 }
 0x697   :  { %1323 = vrsqrt.f32 %v756_v1 }
 0x6a0   :  { %v1322_v6 = vpop.eup %1321 }
 0x6a1   :  { %v759_v7 = vmul.f32 %v1322_v6, %v1857_v13  ;;  %v887_v13 = vld [vmem:[%s2046_s5 + $0x18] sm:$0xff]  ;;  %v1025_v6 = vsub.s32 6, %v1706_v53 }
 0x6a2   :  { %1168 = vmatpush3.msra.mxu1 %v887_v13 }
 0x6a3   :  { %v765_v15 = vmul.f32 %v764_v5, %v759_v7  ;;  %v1031_v7 = vsub.s32 7, %v1706_v53 }
 0x6a4   :  { %v1324_v17 = vpop.eup %1323 }
 0x6a5   :  { %v771_v19 = vadd.f32 %v770_v9, %v765_v15  ;;  %v760_v23 = vmul.f32 %v1324_v17, %v1861_v21  ;;  %v902_v21 = vld [vmem:[%s2046_s5 + $0x90] sm:$0xff] }
 0x6a6   :  { %1169 = vmatprep.subr.mxu1 %v902_v21 }
 0x6a7   :  { %1077 = vmatmul.mubr.msk.f32.vlgmr.msra.gmra.mxu0 %vm100_vm0, %v771_v19  ;;  %v766_v28 = vmul.f32 %v764_v5, %v760_v23 }
 0x6a8   :  { %873 = vmatprep.mubr.f32.mxu0 %v1420_v0  ;;  %v886_v0 = vld [vmem:[%s2046_s5 + $0x10] sm:$0xff]  ;;  %s1422_s5 = smov [#allocation8]  }
 0x6a9   :  { %v772_v24 = vadd.f32 %v770_v9, %v766_v28  ;;  %1170 = vmatpush3.msra.mxu1 %v886_v0  ;;  %v1026_v9 = vrot.slane %v1709_v57, %v1025_v6  ;;  %s1042_s13 = sshll.u32 %s1422_s5, 4  ;;  %s1043_s13 = int_to_ptr.vmem [resolvable:$true] %s1042_s13 }
 0x6aa   :  { %1171 = vmatprep.subr.mxu1 %v901_v29  ;;  %s1389_s16 = scalar_lea.vmem %s1043_s13, 256  ;;  %p1394_p2 = scmp.lt.s32.totalorder %s1043_s13, %s1043_s13 }
 0x6ab   :  { %1078 = vmatmul.mubr.msk.f32.gmra.mxu0 %vm100_vm0, %v772_v24  ;;  %1172 = vmatpush3.msra.mxu1 %v885_v31  ;;  %p1390_p1 = scmp.ne.s32.totalorder %s1043_s13, %s1389_s16  ;;  %p1395_p3 = scmp.lt.s32.totalorder %s1389_s16, %s1389_s16 }
 0x6ac   :  { %1173 = vmatprep.subr.mxu1 %v900_v33 }
 0x6ad   :  { %1174 = vmatpush3.msra.mxu1 %v884_v11  ;;  %p1396_p4 = por %p1395_p3, %p1394_p2 }
 0x6af   :  { %p1397_p5 = pnand %p1396_p4, %p1390_p1 }
 0x767   :  { %v869_v41 = vpop.f32.mrf.mxu0 }
 0x768   :  { %v870_v8 = vadd.f32 %v869_v41, %v792_v37 }
 0x769   :  { %v871_v43 = vpop.f32.mrf.mxu0 }
 0x76a   :  { %v872_v45 = vadd.f32 %v871_v43, %v796_v39  ;;  %v880_v10 = vmax.f32 %v870_v8, 0.0 }
 0x76b   :  { %v875_v46 = vpop.f32.mrf.mxu0 }
 0x76c   :  { %v881_v16 = vmax.f32 %v872_v45, 0.0  ;;  %v876_v14 = vadd.f32 %v875_v46, %v792_v37 }
 0x76d   :  { %v877_v22 = vpop.f32.mrf.mxu0 }
 0x76e   :  { %v878_v20 = vadd.f32 %v877_v22, %v796_v39  ;;  %984 = vmatprep.mubr.f32.mxu1 %v881_v16  ;;  %v882_v25 = vmax.f32 %v876_v14, 0.0 }
 0x76f   :  { %985 = vmatmul.mubr.f32.vlgmr.msra.gmra.mxu1 %v880_v10 }
 0x770   :  { %v883_v27 = vmax.f32 %v878_v20, 0.0 }
 0x772   :  { %989 = vmatprep.mubr.f32.mxu1 %v883_v27 }
 0x773   :  { %990 = vmatmul.mubr.f32.gmra.mxu1 %v882_v25 }
 0x82f   :  { %v1175_v30 = vpop.f32.mrf.mxu1 }
 0x831   :  { %v1176_v36 = vpop.f32.mrf.mxu1 }
 0x832   :  { %v1177_v34 = vadd.f32 %v1176_v36, %v1175_v30 }
 0x833   :  { %v1178_v40 = vpop.f32.mrf.mxu1 }
 0x834   :  { %v987_v38 = vadd.f32 %v1177_v34, %v919_v59 }
 0x835   :  { %v1179_v44 = vpop.f32.mrf.mxu1 }
 0x836   :  { %v1180_v42 = vadd.f32 %v1179_v44, %v1178_v40  ;;  %v995_v4 = vadd.f32 %v987_v38, %v771_v19  ;;  %v1032_v19 = vrot.slane %v1709_v57, %v1031_v7 }
 0x838   :  { %v992_v12 = vadd.f32 %v1180_v42, %v919_v59  ;;  %v997_v18 = vsel %vm100_vm0, %v995_v4, 0.0 }
 0x839   :  { %998 = vadd.xlane.f32.xlu1 %v997_v18 }
 0x83a   :  { %v996_v47 = vadd.f32 %v992_v12, %v772_v24 }
 0x83c   :  { %v1000_v48 = vsel %vm100_vm0, %v996_v47, 0.0 }
 0x83d   :  { %1001 = vadd.xlane.f32.xlu0 %v1000_v48 }
 0x8c2   :  { %v999_v49 = vpop.xlane.xlu1 %998 }
 0x8c3   :  { %v1003_v50 = vmul.f32 0.015625, %v999_v49 }
 0x8c5   :  { %v1005_v51 = vsub.f32 %v995_v4, %v1003_v50 }
 0x8c6   :  { %v1002_v52 = vpop.xlane.xlu0 %1001 }
 0x8c7   :  { %v1004_v54 = vmul.f32 0.015625, %v1002_v52  ;;  %v1007_v55 = vmul.f32 %v1005_v51, %v1005_v51 }
 0x8c9   :  { %v1006_v56 = vsub.f32 %v996_v47, %v1004_v54  ;;  %v1009_v58 = vsel %vm100_vm0, %v1007_v55, 0.0 }
 0x8ca   :  { %1010 = vadd.xlane.f32.xlu1 %v1009_v58 }
 0x8cb   :  { %v1008_v60 = vmul.f32 %v1006_v56, %v1006_v56 }
 0x8cd   :  { %v1012_v61 = vsel %vm100_vm0, %v1008_v60, 0.0 }
 0x8ce   :  { %1013 = vadd.xlane.f32.xlu0 %v1012_v61 }
 0x953   :  { %v1011_v62 = vpop.xlane.xlu1 %1010 }
 0x954   :  { %v1015_v63 = vmul.f32 0.015625, %v1011_v62 }
 0x956   :  { %v1017_v1 = vadd.f32 1e-05, %v1015_v63 }
 0x957   :  { %v1014_v2 = vpop.xlane.xlu0 %1013 }
 0x958   :  { %1325 = vrsqrt.f32 %v1017_v1  ;;  %v1016_v3 = vmul.f32 0.015625, %v1014_v2 }
 0x95a   :  { %v1018_v5 = vadd.f32 1e-05, %v1016_v3 }
 0x95c   :  { %1327 = vrsqrt.f32 %v1018_v5 }
 0x965   :  { %v1326_v15 = vpop.eup %1325 }
 0x966   :  { %v1021_v17 = vmul.f32 %v1326_v15, %v1005_v51 }
 0x968   :  { %v1027_v23 = vmul.f32 %v1026_v9, %v1021_v17 }
 0x969   :  { %v1328_v28 = vpop.eup %1327 }
 0x96a   :  { %v1022_v24 = vmul.f32 %v1328_v28, %v1006_v56  ;;  %v1033_v26 = vadd.f32 %v1032_v19, %v1027_v23 }
 0x96c   :  { %v1028_v13 = vmul.f32 %v1026_v9, %v1022_v24  ;;  %1035 = vst.msk [vmem:[#allocation8] sm:$0xff] %vm100_vm0, %v1033_v26 }
 0x96e   :  { %v1034_v21 = vadd.f32 %v1032_v19, %v1028_v13 }
 0x970   :  { %1036 = vst.msk [vmem:[#allocation8 + $0x8] sm:$0xff] %vm100_vm0, %v1034_v21 }
 0x971   :  { %1400 = shalt.err (!%p1397_p5)
}
 0x972   :  { %1048 = dma.vmem_to_hbm [thread:$0]  %s1043_s13, 256, %s2050_s9, [#allocation4], %s1417_s14, %s1417_s14, %s1418_s15  }
 0x973   :  { %1413 = dma.done.wait [#allocation4], 256  }
 0x974   :  { %1414 = vsyncadd [#allocation4], 4294967040 }
 0x975   :  { %1052 = vsyncpa [#allocation3], 1 }
 0x976   :  { %1053 = vsyncpa [#allocation6], 1 }
 0x977   :  { %1054 = vsyncpa [#allocation4], 1 }

</bundles_post_ra>
